<compile_context>
chip_gen: v7x
topology: tpu7x:2x2x1
jax: 0.10.0
libtpu: 0.0.40
codegen_flags: <defaults>
</compile_context>

<pallas_src>
import functools

import jax
import jax.numpy as jnp
from jax.experimental import pallas as pl
from jax.experimental.pallas import tpu as pltpu


NUM_CLASSES = 10
C_PAD = 128          # lane-dense padded class dimension
NEG_BIG = -1.0e30    # finite "minus infinity" bias for padded classes (avoid 0*inf)


def _round_up(v, m):
    return ((v + m - 1) // m) * m


def _cdiv(a, b):
    return -(-a // b)


# --------------------------- device / tiling heuristics -----------------------


def _vmem_capacity_bytes():
    try:
        cap = getattr(pltpu.get_tpu_info(), "vmem_capacity_bytes", None)
        if cap:
            return int(cap)
    except Exception:
        pass
    try:
        kind = jax.devices()[0].device_kind.lower()
    except Exception:
        kind = ""
    if "v5" in kind or "v6" in kind:
        return 128 << 20
    return 64 << 20            # conservative default (v7x-class part: 64 MiB / TC)


def _budgets():
    """(tile_budget, vmem_limit_cap) per TPU generation."""
    cap = _vmem_capacity_bytes()
    if cap >= (100 << 20):                 # v5e / v6e: 128 MiB physical VMEM
        return (48 << 20), (96 << 20)
    return (20 << 20), (52 << 20)          # v7x-class: 64 MiB per TensorCore


def _tile_footprint(tb, td):
    x_b = 2 * tb * td * 4            # double-buffered f32 x tile (dominant)
    w_b = 2 * td * C_PAD * 2         # bf16 weight tile (conservatively 2 buffers)
    acc_b = tb * C_PAD * 4           # f32 accumulator scratch
    out_b = 2 * tb * C_PAD * 4       # double-buffered f32 output tile
    misc = 2 * tb * 4 + 2 * C_PAD * 4
    return x_b + w_b + acc_b + out_b + misc + (2 << 20)


def _choose_tiles(B, D, tile_budget):
    """Pick (TB, TD, nk): batch tile, reduction tile, #reduction grid steps."""
    tb_cap = min(1024, _round_up(max(B, 1), 8))
    tb_candidates = [t for t in (1024, 512, 256) if t <= tb_cap] or [tb_cap]
    # Prefer a single K block (whole D resident) with the largest batch tile.
    for tb in tb_candidates:
        if _tile_footprint(tb, D) <= tile_budget:
            return tb, D, 1
    # Otherwise tile the reduction (D) axis; keep TB in the sweet spot.
    tb = min(512, tb_candidates[0])
    td = _round_up(D, 128)
    while td > 512 and _tile_footprint(tb, td) > tile_budget:
        td = _round_up(max(512, td // 2), 128)
    nk = _cdiv(D, td)
    if nk == 1:
        return tb, D, 1
    return tb, td, nk


def _vmem_limit_bytes(tb, td, cap_limit):
    need = _tile_footprint(tb, td) + (4 << 20)          # headroom
    return int(min(max(need, 32 << 20), cap_limit))


def _maybe_single_buffered(block_shape, index_map):
    """Constant block (index_map ignores the grid): request single buffering."""
    try:
        return pl.BlockSpec(block_shape, index_map, pipeline_mode=pl.Buffered(1))
    except Exception:   # pipeline_mode / Buffered unavailable -> plain double buffer
        return pl.BlockSpec(block_shape, index_map)


def _io_specs(TB, TD, nk):
    x_spec = pl.BlockSpec((TB, TD), lambda i, k: (i, k))
    if nk == 1:
        w_map = lambda i, k: (0, 0)                      # constant resident block
        if TD * C_PAD * 2 > (512 << 10):                 # only worth it when big
            w_spec = _maybe_single_buffered((TD, C_PAD), w_map)
        else:
            w_spec = pl.BlockSpec((TD, C_PAD), w_map)
    else:
        w_spec = pl.BlockSpec((TD, C_PAD), lambda i, k: (k, 0))
    b_spec = pl.BlockSpec((1, C_PAD), lambda i, k: (0, 0))
    return x_spec, w_spec, b_spec


# ----------------------------------- kernels ----------------------------------


def _masked_blocks(x_ref, w_ref, k, block_d, d, ragged_k):
    """Load (x, W) blocks; zero-mask the ragged tail of the last K tile on BOTH
    sides so stale-VMEM garbage (possibly NaN) cannot reach the accumulation."""
    x_blk = x_ref[...]
    w_blk = w_ref[...]
    if ragged_k:
        valid_cols = d - k * block_d
        col = jax.lax.broadcasted_iota(jnp.int32, x_blk.shape, 1)
        x_blk = jnp.where(col < valid_cols, x_blk, 0.0)
        row = jax.lax.broadcasted_iota(jnp.int32, w_blk.shape, 0)
        w_blk = jnp.where(row < valid_cols, w_blk, jnp.zeros_like(w_blk))
    return x_blk, w_blk


def _logits_kernel(x_ref, w_ref, b_ref, out_ref, acc_ref, *, block_d, d, ragged_k):
    k = pl.program_id(1)

    @pl.when(k == 0)
    def _init():
        acc_ref[...] = jnp.zeros_like(acc_ref)

    x_blk, w_blk = _masked_blocks(x_ref, w_ref, k, block_d, d, ragged_k)
    # f32 x streamed from HBM; bf16 cast happens here, right before the MXU.
    acc_ref[...] += jnp.dot(x_blk.astype(jnp.bfloat16), w_blk,
                            preferred_element_type=jnp.float32)

    @pl.when(k == pl.num_programs(1) - 1)
    def _finish():
        out_ref[...] = acc_ref[...] + b_ref[...]


def _ce_loss_kernel(x_ref, w_ref, b_ref, y_ref, part_ref, acc_ref,
                    *, block_b, block_d, batch, d, ragged_b, ragged_k):
    i = pl.program_id(0)
    k = pl.program_id(1)

    @pl.when(k == 0)
    def _init():
        acc_ref[...] = jnp.zeros_like(acc_ref)

    x_blk, w_blk = _masked_blocks(x_ref, w_ref, k, block_d, d, ragged_k)
    acc_ref[...] += jnp.dot(x_blk.astype(jnp.bfloat16), w_blk,
                            preferred_element_type=jnp.float32)

    @pl.when(k == pl.num_programs(1) - 1)
    def _finish():
        logits = acc_ref[...] + b_ref[...]                       # (TB, 128) f32
        # numerically stable log-softmax (padded classes carry -1e30 bias -> exp==0)
        m = jnp.max(logits, axis=-1, keepdims=True)
        shifted = logits - m
        lse = jnp.log(jnp.sum(jnp.exp(shifted), axis=-1, keepdims=True))
        logp = shifted - lse
        classes = jax.lax.broadcasted_iota(jnp.int32, logits.shape, 1)
        onehot = (classes == y_ref[...]).astype(jnp.float32)     # y_ref is (TB, 1)
        per_example = -jnp.sum(onehot * logp, axis=-1, keepdims=True)   # (TB, 1)
        if ragged_b:
            # Last batch tile is partial: explicitly zero out-of-range rows
            # (their logits are garbage and may be NaN; where() selects, not mults).
            rows = jax.lax.broadcasted_iota(jnp.int32, per_example.shape, 0)
            per_example = jnp.where(i * block_b + rows < batch, per_example, 0.0)
        partial = jnp.sum(per_example)
        # lane-dense (8, 128) partial-sum tile: value at [0, 0], zeros elsewhere.
        r = jax.lax.broadcasted_iota(jnp.int32, (8, C_PAD), 0)
        c = jax.lax.broadcasted_iota(jnp.int32, (8, C_PAD), 1)
        part_ref[...] = jnp.where((r == 0) & (c == 0), partial, 0.0)


# ---------------------------------- wrappers -----------------------------------


def linear_logits(x, params, *, padded_classes=False):
    """x: (B, D) f32 -> logits (B, 10) f32.  With padded_classes=True, returns the
    raw lane-dense (B, 128) kernel output (skips the strided post-slice; padded
    lanes hold ~-1e30)."""
    w_pad, b_pad = params
    B, D = x.shape
    tile_budget, cap_limit = _budgets()
    TB, TD, nk = _choose_tiles(B, D, tile_budget)
    nb = _cdiv(B, TB)
    ragged_k = (nk > 1) and (D % TD != 0)
    x_spec, w_spec, b_spec = _io_specs(TB, TD, nk)

    kernel = functools.partial(_logits_kernel, block_d=TD, d=D, ragged_k=ragged_k)
    out = pl.pallas_call(
        kernel,
        out_shape=jax.ShapeDtypeStruct((B, C_PAD), jnp.float32),
        grid=(nb, nk),
        in_specs=[x_spec, w_spec, b_spec],
        out_specs=pl.BlockSpec((TB, C_PAD), lambda i, k: (i, 0)),
        scratch_shapes=[pltpu.VMEM((TB, C_PAD), jnp.float32)],
        compiler_params=pltpu.CompilerParams(
            dimension_semantics=("parallel", "arbitrary"),
            vmem_limit_bytes=_vmem_limit_bytes(TB, TD, cap_limit),
        ),
        cost_estimate=pl.CostEstimate(
            flops=2 * B * D * C_PAD,
            transcendentals=0,
            bytes_accessed=B * D * 4 + D * C_PAD * 2 + B * C_PAD * 4,
        ),
    )(x, w_pad, b_pad)
    if padded_classes:
        return out
    return out[:, :NUM_CLASSES]


def cross_entropy_loss(x, params, y):
    """Mean cross-entropy of Linear(x) against int labels y (PyTorch semantics)."""
    w_pad, b_pad = params
    B, D = x.shape
    tile_budget, cap_limit = _budgets()
    TB, TD, nk = _choose_tiles(B, D, tile_budget)
    nb = _cdiv(B, TB)
    ragged_k = (nk > 1) and (D % TD != 0)
    ragged_b = (B % TB != 0)
    x_spec, w_spec, b_spec = _io_specs(TB, TD, nk)
    y2 = y.astype(jnp.int32).reshape(B, 1)

    kernel = functools.partial(
        _ce_loss_kernel, block_b=TB, block_d=TD, batch=B, d=D,
        ragged_b=ragged_b, ragged_k=ragged_k)
    partials = pl.pallas_call(
        kernel,
        out_shape=jax.ShapeDtypeStruct((nb * 8, C_PAD), jnp.float32),
        grid=(nb, nk),
        in_specs=[x_spec, w_spec, b_spec,
                  pl.BlockSpec((TB, 1), lambda i, k: (i, 0))],
        out_specs=pl.BlockSpec((8, C_PAD), lambda i, k: (i, 0)),
        scratch_shapes=[pltpu.VMEM((TB, C_PAD), jnp.float32)],
        compiler_params=pltpu.CompilerParams(
            dimension_semantics=("parallel", "arbitrary"),
            vmem_limit_bytes=_vmem_limit_bytes(TB, TD, cap_limit),
        ),
        cost_estimate=pl.CostEstimate(
            flops=2 * B * D * C_PAD,
            transcendentals=B * C_PAD,
            bytes_accessed=B * D * 4 + D * C_PAD * 2 + B * 4 + nb * 8 * C_PAD * 4,
        ),
    )(x, w_pad, b_pad, y2)
    # tiny wrapper-side reduce: sum of per-block partials / real batch size.
    return jnp.sum(partials) / jnp.float32(B)


def torch_model_forward(x, params, y=None):
    """Mirrors TorchModel.forward: logits if y is None, else mean CE loss."""
    if y is None:
        return linear_logits(x, params)
    return cross_entropy_loss(x, params, y)


def init_params(key, input_size, num_classes=NUM_CLASSES):
    """nn.Linear default init U(-1/sqrt(D), 1/sqrt(D)), stored kernel-ready."""
    kw, kb = jax.random.split(key)
    bound = 1.0 / jnp.sqrt(jnp.float32(input_size))
    w = jax.random.uniform(kw, (num_classes, input_size), jnp.float32, -bound, bound)
    b = jax.random.uniform(kb, (num_classes,), jnp.float32, -bound, bound)
    # pad classes 10 -> 128: zero weight columns, finite -1e30 bias columns.
    w_pad = jnp.zeros((input_size, C_PAD), jnp.float32).at[:, :num_classes].set(w.T)
    b_pad = jnp.full((1, C_PAD), NEG_BIG, jnp.float32).at[0, :num_classes].set(b)
    # Weights kept bf16 (halves W HBM/VMEM traffic); x stays f32 and is cast in-kernel.
    return w_pad.astype(jnp.bfloat16), b_pad


if __name__ == "__main__":
    key = jax.random.PRNGKey(0)
    k_param, k_x, k_y = jax.random.split(key, 3)

    batch, input_size = 8, 32
    params = init_params(k_param, input_size)
    x = jax.random.normal(k_x, (batch, input_size), dtype=jnp.float32)
    y = jax.random.randint(k_y, (batch,), 0, NUM_CLASSES, dtype=jnp.int32)

    # Inference path (no labels): logits (batch, 10)
    logits = torch_model_forward(x, params)
    jax.block_until_ready(logits)

    # Training path (with labels): scalar cross-entropy loss
    loss = torch_model_forward(x, params, y)
    jax.block_until_ready(loss)

    # References.
    w_pad, b_pad = params
    w_f32 = w_pad[:, :NUM_CLASSES].astype(jnp.float32)
    b_f32 = b_pad[:, :NUM_CLASSES]
    # (a) bf16-matched reference (same rounding the kernel applies before the MXU).
    x_bf = x.astype(jnp.bfloat16).astype(jnp.float32)
    ref_logits = x_bf @ w_f32 + b_f32
    ref_logp = jax.nn.log_softmax(ref_logits, axis=-1)
    ref_loss = -jnp.mean(ref_logp[jnp.arange(batch), y])
    # (b) full-f32 reference: bounds the bf16 deviation vs true nn.Linear semantics.
    ref_logits_f32 = jnp.dot(x, w_f32, precision=jax.lax.Precision.HIGHEST) + b_f32
    ref_loss_f32 = -jnp.mean(
        jax.nn.log_softmax(ref_logits_f32, axis=-1)[jnp.arange(batch), y])

    assert logits.shape == (batch, NUM_CLASSES), "logits shape mismatch"
    assert jnp.allclose(logits, ref_logits, atol=1e-3, rtol=1e-3), "logits mismatch"
    assert jnp.allclose(loss, ref_loss, atol=1e-3, rtol=1e-3), "loss mismatch"
    assert jnp.allclose(logits, ref_logits_f32, atol=5e-2, rtol=5e-2), "bf16 drift (logits)"
    assert jnp.allclose(loss, ref_loss_f32, atol=5e-2, rtol=5e-2), "bf16 drift (loss)"

    print("KERNEL_OK")
</pallas_src>

<mosaic_0001>
module attributes {stable_mosaic.version = 11 : i64} {
  func.func @_logits_kernel(%arg0: i32, %arg1: i32, %arg2: memref<8x32xf32, #tpu.memory_space<vmem>>, %arg3: memref<32x128xbf16, #tpu.memory_space<vmem>>, %arg4: memref<1x128xf32, #tpu.memory_space<vmem>>, %arg5: memref<8x128xf32, #tpu.memory_space<vmem>>, %arg6: memref<8x128xf32, #tpu.memory_space<vmem>>) attributes {dimension_semantics = [#tpu.dimension_semantics<parallel>, #tpu.dimension_semantics<arbitrary>], iteration_bounds = array<i64: 1, 1>, scalar_prefetch = 0 : i64, scratch_operands = 1 : i64, tpu.core_type = #tpu.core_type<tc>, window_params = [{transform_indices = @transform_0, window_bounds = array<i64: 8, 32>}, {pipeline_mode = #tpu.pipeline_mode<synchronous>, transform_indices = @transform_1, window_bounds = array<i64: 32, 128>}, {pipeline_mode = #tpu.pipeline_mode<synchronous>, transform_indices = @transform_2, window_bounds = array<i64: 1, 128>}, {transform_indices = @transform_3, window_bounds = array<i64: 8, 128>}]} {
    %c0_i32 = arith.constant 0 : i32
    %0 = arith.cmpi eq, %arg1, %c0_i32 : i32
    %1 = arith.extui %0 : i1 to i32
    %c0_i32_0 = arith.constant 0 : i32
    %2 = arith.cmpi ne, %1, %c0_i32_0 : i32
    scf.if %2 {
      %cst_10 = arith.constant 0.000000e+00 : f32
      %13 = vector.broadcast %cst_10 : f32 to vector<8x128xf32>
      %c0_11 = arith.constant 0 : index
      %c0_12 = arith.constant 0 : index
      %14 = vector.load %arg6[%c0_11, %c0_12] : memref<8x128xf32, #tpu.memory_space<vmem>>, vector<8x128xf32>
      tpu.vector_store %arg6[%c0_11, %c0_12], %13 {strides = array<i32>} : memref<8x128xf32, #tpu.memory_space<vmem>>, vector<8x128xf32>,
    } else {
    }
    %c0 = arith.constant 0 : index
    %c0_1 = arith.constant 0 : index
    %3 = vector.load %arg2[%c0, %c0_1] : memref<8x32xf32, #tpu.memory_space<vmem>>, vector<8x32xf32>
    %c0_2 = arith.constant 0 : index
    %c0_3 = arith.constant 0 : index
    %4 = vector.load %arg3[%c0_2, %c0_3] : memref<32x128xbf16, #tpu.memory_space<vmem>>, vector<32x128xbf16>
    %c0_4 = arith.constant 0 : index
    %c0_5 = arith.constant 0 : index
    %5 = vector.load %arg6[%c0_4, %c0_5] : memref<8x128xf32, #tpu.memory_space<vmem>>, vector<8x128xf32>
    %6 = arith.truncf %3 : vector<8x32xf32> to vector<8x32xbf16>
    %cst = arith.constant dense<0.000000e+00> : vector<8x128xf32>
    %7 = tpu.matmul %6, %4, %cst {dimension_numbers = #tpu.dot_dimension_numbers<[1], [0], [0], [1], [0, 0, 1, 1], [], []>} : vector<8x32xbf16>, vector<32x128xbf16>, vector<8x128xf32> -> vector<8x128xf32>
    %8 = arith.addf %5, %7 : vector<8x128xf32>
    %c0_6 = arith.constant 0 : index
    %c0_7 = arith.constant 0 : index
    %9 = vector.load %arg6[%c0_6, %c0_7] : memref<8x128xf32, #tpu.memory_space<vmem>>, vector<8x128xf32>
    tpu.vector_store %arg6[%c0_6, %c0_7], %8 {strides = array<i32>} : memref<8x128xf32, #tpu.memory_space<vmem>>, vector<8x128xf32>,
    %c0_i32_8 = arith.constant 0 : i32
    %10 = arith.cmpi eq, %arg1, %c0_i32_8 : i32
    %11 = arith.extui %10 : i1 to i32
    %c0_i32_9 = arith.constant 0 : i32
    %12 = arith.cmpi ne, %11, %c0_i32_9 : i32
    scf.if %12 {
      %c0_10 = arith.constant 0 : index
      %c0_11 = arith.constant 0 : index
      %13 = vector.load %arg6[%c0_10, %c0_11] : memref<8x128xf32, #tpu.memory_space<vmem>>, vector<8x128xf32>
      %c0_12 = arith.constant 0 : index
      %c0_13 = arith.constant 0 : index
      %14 = vector.load %arg4[%c0_12, %c0_13] : memref<1x128xf32, #tpu.memory_space<vmem>>, vector<1x128xf32>
      %15 = vector.broadcast %14 : vector<1x128xf32> to vector<8x128xf32>
      %16 = arith.addf %13, %15 : vector<8x128xf32>
      %c0_14 = arith.constant 0 : index
      %c0_15 = arith.constant 0 : index
      %17 = vector.load %arg5[%c0_14, %c0_15] : memref<8x128xf32, #tpu.memory_space<vmem>>, vector<8x128xf32>
      tpu.vector_store %arg5[%c0_14, %c0_15], %16 {strides = array<i32>} : memref<8x128xf32, #tpu.memory_space<vmem>>, vector<8x128xf32>,
    } else {
    }
    return
  }
  func.func @transform_0(%arg0: i32, %arg1: i32) -> (i32, i32) {
    %c0_i32 = arith.constant 0 : i32
    return %arg0, %arg1 : i32, i32
  }
  func.func @transform_1(%arg0: i32, %arg1: i32) -> (i32, i32) {
    %c0_i32 = arith.constant 0 : i32
    %c0_i32_0 = arith.constant 0 : i32
    %c0_i32_1 = arith.constant 0 : i32
    return %c0_i32, %c0_i32_0 : i32, i32
  }
  func.func @transform_2(%arg0: i32, %arg1: i32) -> (i32, i32) {
    %c0_i32 = arith.constant 0 : i32
    %c0_i32_0 = arith.constant 0 : i32
    %c0_i32_1 = arith.constant 0 : i32
    return %c0_i32, %c0_i32_0 : i32, i32
  }
  func.func @transform_3(%arg0: i32, %arg1: i32) -> (i32, i32) {
    %c0_i32 = arith.constant 0 : i32
    %c0_i32_0 = arith.constant 0 : i32
    return %arg0, %c0_i32 : i32, i32
  }
}

</mosaic_0001>

<bundles_post_ra>
// kernel: tpu_custom_call.1
= control target key start
LH: loop header
LB: loop body
LE: loop exit
PB: predicated region body
PF: predicated region fallthrough
CT: control target
= control target key end

     0   :  { %8 = vsyncpa [#allocation4], 0  ;;  %s310_s0 = inlined_call_operand.hbm [shape: f32[8,32], index: 0, kind: input, shape index: {}]   ;;  %s311_s1 = inlined_call_operand.hbm [shape: bf16[32,128], index: 1, kind: input, shape index: {}]   ;;  %s312_s2 = inlined_call_operand.vmem [shape: f32[1,128], index: 2, kind: input, shape index: {}]   ;;  %s313_s3 = inlined_call_operand.hbm [shape: f32[8,128], index: 3, kind: output, shape index: {}]  }
   0x1   :  { %9 = vsyncpa [#allocation7], 0 }
   0x2   :  { %10 = vsyncpa [#allocation5], 0  ;;  %s237_s12 = smov [#allocation3]   ;;  %s238_s14 = smov [#allocation6]  }
   0x3   :  { %s17_s13 = sshll.u32 %s237_s12, 4  ;;  %s26_s15 = sshll.u32 %s238_s14, 4  ;;  %s18_s13 = int_to_ptr.vmem [resolvable:$true] %s17_s13  ;;  %s264_s15 = int_to_ptr.vmem [resolvable:$true] %s26_s15 }
   0x4   :  { %s165_s18 = scalar_lea.hbm %s310_s0, 128 }
   0x5   :  { %p166_p0 = scmp.ne.s32.totalorder %s310_s0, %s165_s18  ;;  %p169_p1 = scmp.lt.u32.totalorder %s165_s18, %s310_s0 }
   0x7   :  { %p171_p2 = pnand %p169_p1, %p166_p0 }
   0x9   :  { %174 = shalt.err (!%p171_p2)
}
   0xa   :  { %s175_s23 = scalar_lea.vmem %s18_s13, 128  ;;  %p180_p4 = scmp.lt.s32.totalorder %s18_s13, %s18_s13 }
   0xb   :  { %p176_p3 = scmp.ne.s32.totalorder %s18_s13, %s175_s23  ;;  %p181_p5 = scmp.lt.s32.totalorder %s175_s23, %s175_s23 }
   0xd   :  { %p182_p6 = por %p181_p5, %p180_p4 }
   0xf   :  { %p183_p7 = pnand %p182_p6, %p176_p3 }
  0x11   :  { %186 = shalt.err (!%p183_p7)
}
  0x12   :  { %20 = dma.hbm_to_vmem [thread:$0]  %s310_s0, 128, %s18_s13, [#allocation4]  }
  0x13   :  { %s187_s28 = scalar_lea.hbm %s311_s1, 256 }
  0x14   :  { %p188_p8 = scmp.ne.s32.totalorder %s311_s1, %s187_s28  ;;  %p191_p9 = scmp.lt.u32.totalorder %s187_s28, %s311_s1 }
  0x16   :  { %p193_p10 = pnand %p191_p9, %p188_p8 }
  0x18   :  { %196 = shalt.err (!%p193_p10)
}
  0x19   :  { %s197_s6 = scalar_lea.vmem %s264_s15, 256  ;;  %p202_p12 = scmp.lt.s32.totalorder %s264_s15, %s264_s15 }
  0x1a   :  { %p198_p11 = scmp.ne.s32.totalorder %s264_s15, %s197_s6  ;;  %p203_p13 = scmp.lt.s32.totalorder %s197_s6, %s197_s6 }
  0x1c   :  { %p204_p0 = por %p203_p13, %p202_p12 }
  0x1e   :  { %p205_p1 = pnand %p204_p0, %p198_p11 }
  0x20   :  { %208 = shalt.err (!%p205_p1)
}
  0x21   :  { %s239_s0 = smov 64   ;;  %s240_s7 = smov 4  }
  0x22   :  { %32 = dma.hbm_to_vmem [thread:$0]  %s311_s1, 256, %s264_s15, [#allocation7], %s239_s0, %s239_s0, %s240_s7  }
  0x23   :  { %231 = dma.done.wait [#allocation4], 128  }
  0x24   :  { %232 = vsyncadd [#allocation4], 4294967168 }
  0x25   :  { %233 = dma.done.wait [#allocation7], 256  }
  0x26   :  { %234 = vsyncadd [#allocation7], 4294967040  ;;  %v241_v0 = vmov 0.0   ;;  %vm242_vm0 = vmmov 0   ;;  %v163_v1 = vld [vmem:[#allocation6] sm:$0xff]   ;;  %v164_v2 = vld [vmem:[#allocation6 + $0x8] sm:$0xff]  }
  0x27   :  { %148 = vmatprep.subr.bf16.mxu0 %v241_v0  ;;  %152 = vmatprep.mubr.msk.bf16.mxu0 %vm242_vm0, %v241_v0  ;;  %v47_v3 = vld [vmem:[#allocation3] sm:$0xff]  ;;  %vm66_vm1 = vcmask 261120   ;;  %s243_s1 = smov [#allocation8]  }
  0x28   :  { %149 = vmatpush3.bf16.msra.mxu0 %v163_v1  ;;  %v53_v4 = vpack.c.bf16 %v47_v3, %v47_v3  ;;  %v144_v5 = vld [vmem:[%s312_s2] ss:$0 sm:$0xff]  ;;  %s131_s12 = sshll.u32 %s243_s1, 4  ;;  %s132_s12 = int_to_ptr.vmem [resolvable:$true] %s131_s12 }
  0x29   :  { %150 = vmatprep.subr.bf16.mxu0 %v241_v0  ;;  %s209_s13 = scalar_lea.vmem %s132_s12, 128  ;;  %p214_p3 = scmp.lt.s32.totalorder %s132_s12, %s132_s12 }
  0x2a   :  { %p210_p2 = scmp.ne.s32.totalorder %s132_s12, %s209_s13  ;;  %p215_p4 = scmp.lt.s32.totalorder %s209_s13, %s209_s13 }
  0x2c   :  { %151 = vmatpush3.bf16.msra.mxu0 %v164_v2  ;;  %p216_p5 = por %p215_p4, %p214_p3 }
  0x2e   :  { %p217_p6 = pnand %p216_p5, %p210_p2 }
  0x2f   :  { %153 = vmatmul.mubr.msk.bf16.vlgmr.msra.gmra.mrb[0].mxu0 %vm66_vm1, %v53_v4 }
 0x102   :  { %v104_v6 = vpop.f32.mrb[0].mxu0 }
 0x103   :  { %v123_v7 = vadd.f32 %v144_v5, %v104_v6  ;;  %v154_v8 = vpop.f32.mrb[1].mxu0 }
 0x104   :  { %v107_v9 = vpop.f32.mrb[2].mxu0 }
 0x105   :  { %124 = vst [vmem:[#allocation8] sm:$0xff] %v123_v7  ;;  %v155_v10 = vpop.f32.mrb[3].mxu0 }
 0x106   :  { %220 = shalt.err (!%p217_p6)
}
 0x107   :  { %s221_s2 = scalar_lea.hbm %s313_s3, 128 }
 0x108   :  { %p222_p7 = scmp.ne.s32.totalorder %s313_s3, %s221_s2  ;;  %p225_p8 = scmp.lt.u32.totalorder %s221_s2, %s313_s3 }
 0x10a   :  { %p227_p9 = pnand %p225_p8, %p222_p7 }
 0x10c   :  { %230 = shalt.err (!%p227_p9)
}
 0x10d   :  { %134 = dma.vmem_to_hbm [thread:$0]  %s132_s12, 128, %s313_s3, [#allocation5]  }
 0x10e   :  { %235 = dma.done.wait [#allocation5], 128  }
 0x10f   :  { %236 = vsyncadd [#allocation5], 4294967168 }
 0x110   :  { %138 = vsyncpa [#allocation4], 1 }
 0x111   :  { %139 = vsyncpa [#allocation7], 1 }
 0x112   :  { %140 = vsyncpa [#allocation5], 1 }

</bundles_post_ra>
